<compile_context>
chip_gen: v5e
topology: v5e:2x2
jax: 0.10.0
libtpu: 0.0.40
codegen_flags: <defaults>
</compile_context>

<pallas_src>
import numpy as np
import jax
import jax.numpy as jnp
from jax.experimental import pallas as pl
from jax.experimental.pallas import tpu as pltpu


# ----------------------------------------------------------------------------
# Deterministic buffer construction (mirrors musical_scale_hz / make_waves).
# ----------------------------------------------------------------------------
def musical_scale_hz(start_midi: int, stop_midi: int, n_steps: int) -> np.ndarray:
    midi = np.linspace(start_midi, stop_midi, n_steps)
    return 440.0 * 2.0 ** ((midi - 69.0) / 12.0)


def make_waves(n_samples: int, f0s: np.ndarray, samplerate: int) -> np.ndarray:
    """Builds a (4 * len(f0s), n_samples) bank of saw/square/triangle/sine waves."""
    # TODO(synk): exact reference make_waves uses scipy.signal.{sawtooth,square};
    # this is a deterministic in-script equivalent.
    saws, squares, tris, sines = [], [], [], []
    for f0 in f0s:
        f = f0 / (samplerate // 2)
        rps = f * np.pi
        radians = np.linspace(0.0, rps * n_samples, n_samples)
        phase = np.mod(radians / (2.0 * np.pi), 1.0)
        saw = 2.0 * phase - 1.0
        sq = np.sign(np.sin(radians))
        tri = 2.0 * np.abs(saw) - 1.0
        sin = np.sin(radians)
        saws.append(saw)
        squares.append(sq)
        tris.append(tri)
        sines.append(sin)
    waves = np.concatenate(
        [np.stack(saws), np.stack(squares), np.stack(tris), np.stack(sines)], axis=0
    )
    return waves.astype(np.float32)


# ----------------------------------------------------------------------------
# Kernels
# ----------------------------------------------------------------------------
def _soft_resonance_kernel(choice_ref, waves_ref, out_ref):
    """relu(choice) @ waves for one wide S-column tile.

    choice_ref: (M, R) resident across the grid (constant index_map).
    waves_ref:  (R, tn) column tile of the wave bank.
    out_ref:    (M, tn) output tile.
    The per-step relu on an (M, R) ~ (8, 16) tile is VPU noise fully hidden
    under the waves DMA (hoisting it under pl.when(j == 0) would break the
    "parallel" megacore sharding of the S axis).
    """
    r = jnp.maximum(choice_ref[...], 0.0)
    out_ref[...] = jnp.dot(
        r, waves_ref[...], preferred_element_type=jnp.float32
    ).astype(out_ref.dtype)


def _gather_row_kernel(idx_ref, waves_ref, out_ref):
    """hard_choice path: one-hot @ waves == row gather.

    The gather happens in the BlockSpec index_map (scalar-prefetched argmax
    indices select which wave row is DMA'd in); the body is a plain copy.
    """
    del idx_ref  # consumed by the index_map only
    out_ref[...] = waves_ref[...]


# ----------------------------------------------------------------------------
# Wrappers
# ----------------------------------------------------------------------------
def _choose_tn(S: int, R: int, M: int, budget_bytes: int = 8 << 20) -> int:
    """Pick the S-column tile width.

    Largest multiple-of-128 divisor of S whose double-buffered working set
    (waves + out tiles) fits the VMEM budget, preferring tiles that leave at
    least 2 grid steps (megacore sharding + DMA overlap).  Falls back to the
    full S (single step) when S is small or not 128-aligned.
    """
    if S % 128 != 0 or S <= 128:
        return S
    per_col = 2 * (R + M) * 4  # double-buffered f32 columns of waves + out tiles
    cands = [
        t for t in range(128, S + 1, 128)
        if S % t == 0 and t * per_col <= budget_bytes
    ]
    if not cands:
        return S
    multi = [t for t in cands if S // t >= 2]
    return max(multi) if multi else max(cands)


def _resonance_soft(choice2d: jax.Array, waves: jax.Array) -> jax.Array:
    M, R = choice2d.shape
    R2, S = waves.shape
    assert R2 == R
    tn = _choose_tn(S, R, M)
    assert S % tn == 0
    n_steps = S // tn

    cost = pl.CostEstimate(
        flops=2 * M * R * S,
        transcendentals=0,
        bytes_accessed=(R * S + M * R + M * S) * 4,
    )
    return pl.pallas_call(
        _soft_resonance_kernel,
        out_shape=jax.ShapeDtypeStruct((M, S), jnp.float32),
        grid_spec=pltpu.PrefetchScalarGridSpec(
            num_scalar_prefetch=0,
            grid=(n_steps,),
            in_specs=[
                # choice stays resident (constant block index across the grid)
                pl.BlockSpec((M, R), lambda j: (0, 0)),
                # wide, lane-dense waves column tile
                pl.BlockSpec((R, tn), lambda j: (0, j)),
            ],
            out_specs=pl.BlockSpec((M, tn), lambda j: (0, j)),
        ),
        compiler_params=pltpu.CompilerParams(
            dimension_semantics=("parallel",),
            vmem_limit_bytes=32 * 1024 * 1024,
        ),
        cost_estimate=cost,
    )(choice2d, waves)


def _resonance_hard(idx: jax.Array, waves: jax.Array, M: int) -> jax.Array:
    """Row gather: out[m, :] = waves[idx[m], :] via scalar-prefetched indices."""
    R, S = waves.shape
    # Reshape so the last two (tiled) dims of every block equal the full array
    # dims -> no (8,128) tiling constraint issues for size-1 row blocks.
    waves3 = waves.reshape(R, 1, S)

    cost = pl.CostEstimate(
        flops=0,
        transcendentals=0,
        bytes_accessed=2 * M * S * 4 + M * 4,
    )
    out = pl.pallas_call(
        _gather_row_kernel,
        out_shape=jax.ShapeDtypeStruct((M, 1, S), jnp.float32),
        grid_spec=pltpu.PrefetchScalarGridSpec(
            num_scalar_prefetch=1,
            grid=(M,),
            in_specs=[
                # data-dependent row selection: block index = idx[m] (block = 1 row)
                pl.BlockSpec((1, 1, S), lambda m, idx_ref: (idx_ref[m], 0, 0)),
            ],
            out_specs=pl.BlockSpec((1, 1, S), lambda m, idx_ref: (m, 0, 0)),
        ),
        compiler_params=pltpu.CompilerParams(
            dimension_semantics=("parallel",),
            vmem_limit_bytes=32 * 1024 * 1024,
        ),
        cost_estimate=cost,
    )(idx, waves3)
    return out.reshape(M, S)


def resonance_forward(choice: jax.Array, waves: jax.Array, hard_choice: bool) -> jax.Array:
    """choice: (B, E, R) f32, waves: (R, S) f32 -> (B, E, S) f32."""
    B, E, R = choice.shape
    R2, S = waves.shape
    assert R2 == R
    M = B * E
    choice2d = choice.reshape(M, R)

    if hard_choice:
        # Forward value of sparse_softmax(choice, normalize=True, dim=-1):
        # one-hot (value 1.0) at the first argmax -> pure row gather.
        # TODO(synk): only the forward value is implemented; the straight-through
        # backward of sparse_softmax would need a custom_vjp.
        idx = jnp.argmax(choice2d, axis=-1).astype(jnp.int32)
        out2d = _resonance_hard(idx, waves, M)
    else:
        out2d = _resonance_soft(choice2d, waves)
    return out2d.reshape(B, E, S)


# ----------------------------------------------------------------------------
# Reference (plain JAX) for verification.
# ----------------------------------------------------------------------------
def resonance_ref(choice, waves, hard_choice):
    if hard_choice:
        idx = jnp.argmax(choice, axis=-1)
        r = jax.nn.one_hot(idx, choice.shape[-1], dtype=jnp.float32)
    else:
        r = jnp.maximum(choice, 0.0)
    return jnp.einsum("ber,rs->bes", r, waves)


if __name__ == "__main__":
    # Small shapes consistent with the module (n_resonances divisible by 4).
    samplerate = 22050
    n_samples = 2048          # small stand-in for exp.n_samples = 2**15
    n_resonances = 16
    batch, n_events = 2, 4

    f0s = musical_scale_hz(start_midi=21, stop_midi=106, n_steps=n_resonances // 4)
    waves_np = make_waves(n_samples, f0s, samplerate)        # (R, S)
    waves = jnp.asarray(waves_np, dtype=jnp.float32)

    key = jax.random.PRNGKey(0)
    choice = jax.random.normal(
        key, (batch, n_events, n_resonances), dtype=jnp.float32
    )

    for hard in (False, True):
        out = resonance_forward(choice, waves, hard_choice=hard)
        out = jax.block_until_ready(out)
        ref = resonance_ref(choice, waves, hard)
        assert out.shape == (batch, n_events, n_samples)
        np.testing.assert_allclose(np.asarray(out), np.asarray(ref),
                                   rtol=1e-5, atol=1e-5)

    print("KERNEL_OK")
</pallas_src>

<mosaic_0001>
module attributes {stable_mosaic.version = 11 : i64} {
  func.func @_soft_resonance_kernel(%arg0: i32, %arg1: memref<8x16xf32, #tpu.memory_space<vmem>>, %arg2: memref<16x1024xf32, #tpu.memory_space<vmem>>, %arg3: memref<8x1024xf32, #tpu.memory_space<vmem>>) attributes {dimension_semantics = [#tpu.dimension_semantics<parallel>], iteration_bounds = array<i64: 2>, scalar_prefetch = 0 : i64, scratch_operands = 0 : i64, tpu.core_type = #tpu.core_type<tc>, window_params = [{pipeline_mode = #tpu.pipeline_mode<synchronous>, transform_indices = @transform_0, window_bounds = array<i64: 8, 16>}, {transform_indices = @transform_1, window_bounds = array<i64: 16, 1024>}, {transform_indices = @transform_2, window_bounds = array<i64: 8, 1024>}]} {
    %c0 = arith.constant 0 : index
    %c0_0 = arith.constant 0 : index
    %0 = vector.load %arg1[%c0, %c0_0] : memref<8x16xf32, #tpu.memory_space<vmem>>, vector<8x16xf32>
    %cst = arith.constant 0.000000e+00 : f32
    %1 = vector.broadcast %cst : f32 to vector<8x16xf32>
    %2 = arith.maximumf %0, %1 : vector<8x16xf32>
    %c0_1 = arith.constant 0 : index
    %c0_2 = arith.constant 0 : index
    %3 = vector.load %arg2[%c0_1, %c0_2] : memref<16x1024xf32, #tpu.memory_space<vmem>>, vector<16x1024xf32>
    %cst_3 = arith.constant dense<0.000000e+00> : vector<8x1024xf32>
    %4 = tpu.matmul %2, %3, %cst_3 {dimension_numbers = #tpu.dot_dimension_numbers<[1], [0], [0], [1], [0, 0, 1, 1], [], []>} : vector<8x16xf32>, vector<16x1024xf32>, vector<8x1024xf32> -> vector<8x1024xf32>
    %c0_4 = arith.constant 0 : index
    %c0_5 = arith.constant 0 : index
    %5 = vector.load %arg3[%c0_4, %c0_5] : memref<8x1024xf32, #tpu.memory_space<vmem>>, vector<8x1024xf32>
    tpu.vector_store %arg3[%c0_4, %c0_5], %4 {strides = array<i32>} : memref<8x1024xf32, #tpu.memory_space<vmem>>, vector<8x1024xf32>,
    return
  }
  func.func @transform_0(%arg0: i32) -> (i32, i32) {
    %c0_i32 = arith.constant 0 : i32
    %c0_i32_0 = arith.constant 0 : i32
    %c0_i32_1 = arith.constant 0 : i32
    return %c0_i32, %c0_i32_0 : i32, i32
  }
  func.func @transform_1(%arg0: i32) -> (i32, i32) {
    %c0_i32 = arith.constant 0 : i32
    %c0_i32_0 = arith.constant 0 : i32
    return %c0_i32, %arg0 : i32, i32
  }
  func.func @transform_2(%arg0: i32) -> (i32, i32) {
    %c0_i32 = arith.constant 0 : i32
    %c0_i32_0 = arith.constant 0 : i32
    return %c0_i32, %arg0 : i32, i32
  }
}

</mosaic_0001>

<bundles_post_ra>
// kernel: tpu_custom_call.1
= control target key start
LH: loop header
LB: loop body
LE: loop exit
PB: predicated region body
PF: predicated region fallthrough
CT: control target
= control target key end

     0   :  { %7 = vsyncpa [#allocation3], 0  ;;  %s876_s0 = inlined_call_operand.hbm [shape: f32[8,16], index: 0, kind: input, shape index: {}]   ;;  %s877_s1 = inlined_call_operand.hbm [shape: f32[16,2048], index: 1, kind: input, shape index: {}]   ;;  %s878_s2 = inlined_call_operand.hbm [shape: f32[8,2048], index: 2, kind: output, shape index: {}]  }
   0x1   :  { %8 = vsyncpa [#allocation6], 0 }
   0x2   :  { %10 = vsyncpa [#allocation6 + $0x1], 0 }
   0x3   :  { %11 = vsyncpa [#allocation4], 0 }
   0x4   :  { %13 = vsyncpa [#allocation4 + $0x1], 0  ;;  %s707_s9 = smov 0   ;;  %s709_s10 = smov 0  }
   0x5   :  { %s711_s11 = smov 0   ;;  %s713_s12 = smov 0  }
   0x6 LB: > { %s728_s13 = sadd.s32 4294967295, %s686_s12   ;;  %s470_s14 = sadd.s32 4294967294, %s686_s12   ;;  %s686_s12 = sphi %s713_s12, %s889_s12   ;;  %s682_s11 = sphi %s711_s11, %s888_s11   ;;  %s678_s10 = sphi %s709_s10, %s887_s10   ;;  %s674_s9 = sphi %s707_s9, %s886_s9  }
   0x7   : > { %s732_s15 = sadd.s32 1, %s686_s12   ;;  %s47_s16 = sadd.s32 1, %s682_s11 }
   0x8   : > { %s44_s17 = ssub.s32 %s686_s12, %s732_s15  ;;  %p54_p0 = scmp.ne.s32.totalorder %s682_s11, %s678_s10 }
   0x9   : > { %p45_p1 = scmp.eq.s32.totalorder %s44_s17, 0  ;;  %p55_p2 = scmp.eq.s32.totalorder %s686_s12, 0 }
   0xa   : > { %p60_p3 = scmp.ne.s32.totalorder %s678_s10, %s674_s9  ;;  %p61_p4 = scmp.eq.s32.totalorder %s728_s13, 0 }
   0xb   : > { %s744_s18 = scalar_select %p45_p1, %s682_s11, %s47_s16  }
   0xc   : > { %p746_p5 = por %p55_p2, %p54_p0  ;;  %p752_p6 = por %p61_p4, %p60_p3 }
   0xd   : > { %p84_p7 = scmp.eq.s32.totalorder %s728_s13, 1  ;;  %p90_p8 = scmp.eq.s32.totalorder %s470_s14, 1 }
   0xe   : > { %p471_p9 = scmp.ge.s32.totalorder %s686_s12, 1  ;;  %p97_p10 = scmp.lt.s32.totalorder %s686_s12, 3 }
   0xf   : > { %p759_p11 = por %p84_p7, %p54_p0  ;;  %p763_p12 = por %p90_p8, %p60_p3 }
  0x10   : > { %p767_p13 = pnand %p471_p9, %p97_p10  ;;  %s109_s26 = sshll.u32 %s876_s0, 4  ;;  %s110_s26 = int_to_ptr.hbm [resolvable:$true] %s109_s26 }
  0x11   : > { %s688_s27 = smov [#allocation2]   ;;  %p517_p3 = scmp.lt.s32.totalorder %s686_s12, 2 }
  0x12   : > { %p504_p1 = pneg %p767_p13  ;;  %s111_s28 = sshll.u32 %s688_s27, 4  ;;  %s112_s28 = int_to_ptr.vmem [resolvable:$true] %s111_s28 }
  0x13   : > { %s122_s29 = sand.u32 1, %s682_s11   ;;  %p783_p7 = pnand %p517_p3, %p746_p5 }
  0x14   : > { %p505_p2 = pnand %p504_p1, %p61_p4  ;;  %s474_s3 = sshll.u32 %s122_s29, 7 }
  0x15   : > { %s494_s4 = sshll.u32 %s686_s12, 6  ;;  %s126_s14 = scalar_lea.vmem [#allocation5], %s474_s3 }
  0x16   : > { %507 = dma.hbm_to_vmem [thread:$0]  (!%p505_p2), %s110_s26, 128, %s112_s28, [#allocation3]  }
  0x17   : > { %s131_s7 = scalar_lea.hbm %s877_s1, %s494_s4  ;;  %s134_s16 = sshll.u32 %s126_s14, 4  ;;  %s135_s16 = int_to_ptr.vmem [resolvable:$true] %s134_s16 }
  0x18   : > { %s132_s8 = sshll.u32 %s131_s7, 4  ;;  %s123_s17 = scalar_lea.sflag [#allocation6], %s122_s29  ;;  %s133_s8 = int_to_ptr.hbm [resolvable:$true] %s132_s8 }
  0x19   : > { %s586_s24 = sshra.s32 %s133_s8, 4  ;;  %p590_p8 = pneg %p783_p7  ;;  %s587_s24 = int_to_ptr.hbm [resolvable:$true] %s586_s24 }
  0x1a   : > { %s588_s19 = scalar_lea.hbm %s587_s24, 128  ;;  %s593_s27 = scalar_lea.hbm %s877_s1, 256 }
  0x1b   : > { %p589_p5 = scmp.ne.s32.totalorder %s587_s24, %s588_s19  ;;  %p594_p1 = scmp.lt.s32.totalorder %s587_s24, %s877_s1 }
  0x1c   : > { %p595_p2 = scmp.lt.s32.totalorder %s593_s27, %s588_s19 }
  0x1d   : > { %p591_p9 = pnand %p590_p8, %p589_p5 }
  0x1e   : > { %p596_p3 = por %p595_p2, %p594_p1 }
  0x1f   : > { %p592_p10 = pneg %p591_p9 }
  0x21   : > { %p597_p0 = pnand %p596_p3, %p592_p10 }
  0x23   : > { %600 = shalt.err (!%p597_p0)
}
  0x24   : > { %s689_s29 = smov 2048   ;;  %s690_s3 = smov 1024  }
  0x25   : > { %s691_s5 = smov 64   ;;  %146 = sbr.rel (%p767_p13) target bundleno = 196 (0xc4), region = 28 }
  0x26   : > { %511 = dma.hbm_to_vmem [thread:$0]  (!%p783_p7), %s133_s8, 2048, %s135_s16, %s123_s17, %s689_s29, %s690_s3, %s691_s5  }
  0x2a   : > { %661 = dma.done.wait (%p61_p4), [#allocation3], 128  }
  0x2b   : > { %663 = vsyncadd (%p61_p4), [#allocation3], 4294967168  ;;  %s808_s6 = sand.u32 1, %s678_s10  }
  0x2c   : > { %s479_s7 = sshll.u32 %s808_s6, 7  ;;  %s154_s14 = scalar_lea.sflag [#allocation6], %s808_s6 }
  0x2d   : > { %s812_s24 = scalar_lea.vmem [#allocation5], %s479_s7 }
  0x2e   : > { %665 = dma.done.wait (%p752_p6), %s154_s14, 2048  }
  0x2f   : > { %667 = vsyncadd (%p752_p6), %s154_s14, 4294965248  ;;  %v193_v0 = vld [vmem:[%s812_s24 + $0x50] sm:$0xff]  ;;  %v194_v1 = vld [vmem:[%s812_s24 + $0x58] sm:$0xff]  ;;  %vm199_vm0 = vcmask 130048   ;;  %s480_s20 = sshll.u32 %s808_s6, 6  ;;  %s495_s30 = sshll.u32 %s728_s13, 6 }
  0x30   : > { %v185_v2 = vld [vmem:[%s812_s24 + $0x10] sm:$0xff]  ;;  %257 = vmatpush.msra.mxu2 %v193_v0  ;;  %277 = vmatpush.msra.mxu3 %v194_v1  ;;  %v186_v3 = vld [vmem:[%s812_s24 + $0x18] sm:$0xff]  ;;  %v191_v8 = vld [vmem:[%s812_s24 + $0x40] sm:$0xff]  ;;  %s178_s23 = scalar_lea.vmem [#allocation7], %s480_s20  ;;  %s383_s17 = scalar_lea.hbm %s878_s2, %s495_s30 }
  0x31   : > { %v181_v4 = vld [vmem:[#allocation2] sm:$0xff]  ;;  %v197_v6 = vld [vmem:[%s812_s24 + $0x70] sm:$0xff]  ;;  %v192_v9 = vld [vmem:[%s812_s24 + $0x48] sm:$0xff]  ;;  %217 = vmatpush.msra.mxu0 %v191_v8  ;;  %s385_s19 = sshll.u32 %s178_s23, 4  ;;  %s387_s25 = sshll.u32 %s383_s17, 4  ;;  %s386_s19 = int_to_ptr.vmem [resolvable:$true] %s385_s19  ;;  %s388_s25 = int_to_ptr.hbm [resolvable:$true] %s387_s25 }
  0x32   : > { %v182_v5 = vmax.f32 %v181_v4, 0.0  ;;  %v198_v7 = vld [vmem:[%s812_s24 + $0x78] sm:$0xff]  ;;  %258 = vmatpush.msra.mxu2 %v185_v2  ;;  %278 = vmatpush.msra.mxu3 %v186_v3  ;;  %v189_v10 = vld [vmem:[%s812_s24 + $0x30] sm:$0xff]  ;;  %v183_v12 = vld [vmem:[%s812_s24] sm:$0xff]  ;;  %s372_s13 = scalar_lea.sflag [#allocation4], %s808_s6  ;;  %s630_s26 = sshra.s32 %s388_s25, 4  ;;  %s631_s26 = int_to_ptr.hbm [resolvable:$true] %s630_s26 }
  0x33   : > { %v190_v11 = vld [vmem:[%s812_s24 + $0x38] sm:$0xff]  ;;  %v184_v13 = vld [vmem:[%s812_s24 + $0x8] sm:$0xff]  ;;  %237 = vmatpush.msra.mxu1 %v192_v9  ;;  %v195_v14 = vld [vmem:[%s812_s24 + $0x60] sm:$0xff]  ;;  %218 = vmatpush.msra.mxu0 %v183_v12  ;;  %s632_s27 = scalar_lea.hbm %s631_s26, 64  ;;  %s636_s29 = scalar_lea.hbm %s878_s2, 128 }
  0x34   : > { %483 = vmatmul.msk.f32.vlgmr.msra.gmra.mxu2 %vm199_vm0, %v182_v5  ;;  %484 = vmatmul.msk.f32.vlgmr.msra.gmra.mxu3 %vm199_vm0, %v182_v5  ;;  %v196_v15 = vld [vmem:[%s812_s24 + $0x68] sm:$0xff]  ;;  %v187_v16 = vld [vmem:[%s812_s24 + $0x20] sm:$0xff]  ;;  %p633_p4 = scmp.ne.s32.totalorder %s631_s26, %s632_s27  ;;  %p637_p0 = scmp.lt.s32.totalorder %s631_s26, %s878_s2 }
  0x35   : > { %337 = vmatpush.msrb.mxu2 %v197_v6  ;;  %357 = vmatpush.msrb.mxu3 %v198_v7  ;;  %v188_v17 = vld [vmem:[%s812_s24 + $0x28] sm:$0xff]  ;;  %p638_p7 = scmp.lt.s32.totalorder %s636_s29, %s632_s27 }
  0x36   : > { %238 = vmatpush.msra.mxu1 %v184_v13  ;;  %481 = vmatmul.msk.f32.vlgmr.msra.gmra.mxu0 %vm199_vm0, %v182_v5  ;;  %p634_p6 = pnand %p633_p4, %p759_p11 }
  0x37   : > { %338 = vmatpush.msrb.mxu2 %v189_v10  ;;  %358 = vmatpush.msrb.mxu3 %v190_v11  ;;  %p639_p5 = por %p638_p7, %p637_p0 }
  0x38   : > { %482 = vmatmul.msk.f32.vlgmr.msra.gmra.mxu1 %vm199_vm0, %v182_v5  ;;  %297 = vmatpush.msrb.mxu0 %v195_v14  ;;  %p635_p13 = pneg %p634_p6 }
  0x39   : > { %317 = vmatpush.msrb.mxu1 %v196_v15 }
  0x3a   : > { %298 = vmatpush.msrb.mxu0 %v187_v16  ;;  %p640_p8 = pnand %p639_p5, %p635_p13 }
  0x3b   : > { %318 = vmatpush.msrb.mxu1 %v188_v17 }
  0x3c   : > { %487 = vmatmul.msk.f32.vlgmr.msrb.gmra.mxu2 %vm199_vm0, %v182_v5  ;;  %488 = vmatmul.msk.f32.vlgmr.msrb.gmra.mxu3 %vm199_vm0, %v182_v5 }
  0x3e   : > { %485 = vmatmul.msk.f32.vlgmr.msrb.gmra.mxu0 %vm199_vm0, %v182_v5 }
  0x40   : > { %486 = vmatmul.msk.f32.vlgmr.msrb.gmra.mxu1 %vm199_vm0, %v182_v5 }
  0xb3   : > { %v220_v18 = vpop.f32.mrf.mxu0 }
  0xb4   : > { %363 = vst [vmem:[%s178_s23] sm:$0xff] %v220_v18 }
  0xb5   : > { %v240_v19 = vpop.f32.mrf.mxu1 }
  0xb6   : > { %364 = vst [vmem:[%s178_s23 + $0x8] sm:$0xff] %v240_v19 }
  0xb7   : > { %v260_v20 = vpop.f32.mrf.mxu2  ;;  %v280_v21 = vpop.f32.mrf.mxu3 }
  0xb8   : > { %365 = vst [vmem:[%s178_s23 + $0x10] sm:$0xff] %v260_v20 }
  0xb9   : > { %366 = vst [vmem:[%s178_s23 + $0x18] sm:$0xff] %v280_v21 }
  0xbb   : > { %v300_v22 = vpop.f32.mrf.mxu0 }
  0xbc   : > { %367 = vst [vmem:[%s178_s23 + $0x20] sm:$0xff] %v300_v22 }
  0xbd   : > { %v320_v23 = vpop.f32.mrf.mxu1 }
  0xbe   : > { %368 = vst [vmem:[%s178_s23 + $0x28] sm:$0xff] %v320_v23 }
  0xbf   : > { %v340_v24 = vpop.f32.mrf.mxu2  ;;  %v360_v25 = vpop.f32.mrf.mxu3 }
  0xc0   : > { %369 = vst [vmem:[%s178_s23 + $0x30] sm:$0xff] %v340_v24 }
  0xc1   : > { %370 = vst [vmem:[%s178_s23 + $0x38] sm:$0xff] %v360_v25 }
  0xc2   : > { %643 = shalt.err (!%p640_p8)
}
  0xc3   : > { %502 = dma.vmem_to_hbm [thread:$0]  (%p759_p11), %s386_s19, 1024, %s388_s25, %s372_s13  }
  0xc4 PF: > { %s399_s6 = sand.u32 1, %s674_s9   ;;  %p885_p9 = scmp.ge.s32.totalorder %s686_s12, 2 }
  0xc5   : > { %s400_s7 = scalar_lea.sflag [#allocation4], %s399_s6 }
  0xc6   : > { %p513_p10 = pnand %p885_p9, %p763_p12 }
  0xc8   : > { %p514_p1 = pneg %p513_p10 }
  0xca   : > { %669 = dma.done.wait (%p514_p1), %s400_s7, 1024  }
  0xcb   : > { %671 = vsyncadd (%p514_p1), %s400_s7, 4294966272  ;;  %p16_p2 = scmp.ge.s32.totalorder %s732_s15, 4   ;;  %s886_s9 = smov %s678_s10 }
  0xcc   : > { %s887_s10 = smov %s682_s11  ;;  %s888_s11 = smov %s744_s18 }
  0xcd   : > { %s889_s12 = smov %s732_s15  ;;  %18 = sbr.rel (!%p16_p2) target bundleno = 6 (0x6), region = 78 }
  0xd2   :  { %406 = vsyncpa [#allocation3], 1 }
  0xd3   :  { %408 = vsyncpa [#allocation3 + $0x1], 1 }
  0xd4   :  { %409 = vsyncpa [#allocation6], 1 }
  0xd5   :  { %411 = vsyncpa [#allocation6 + $0x1], 1 }
  0xd6   :  { %412 = vsyncpa [#allocation4], 1 }
  0xd7   :  { %414 = vsyncpa [#allocation4 + $0x1], 1 }

</bundles_post_ra>
